<compile_context>
chip_gen: v6e
topology: v6e:2x2x1
jax: 0.10.0
libtpu: 0.0.40
codegen_flags: <defaults>
</compile_context>

<pallas_src>
import functools

import numpy as np
import jax
import jax.numpy as jnp
from jax import lax
from jax.experimental import pallas as pl
from jax.experimental.pallas import tpu as pltpu

BN_EPS = 1e-5
BCE_LOG_CLAMP = 100.0   # nn.BCELoss clamps log() at -100, i.e. per-sample loss <= 100


def _adv_loss_kernel(x_ref, w1_ref, g1_ref, be1_ref,
                     w2_ref, g2_ref, be2_ref,
                     w3_ref, b3_ref, out_ref):
    """Single program. Rows [0, B) = source (y=1), rows [B, 2B) = target (y=0)."""
    x = x_ref[...]                                    # (2B, F) bf16
    two_b = x.shape[0]
    b = two_b // 2
    inv_b = 1.0 / b

    def bn_relu_per_domain(h, g, be):
        # Training-mode BatchNorm with per-domain batch statistics (matches the
        # PyTorch module, which calls the discriminator separately per domain).
        def norm(hd):
            mu = jnp.mean(hd, axis=0, keepdims=True)
            d = hd - mu
            var = jnp.mean(d * d, axis=0, keepdims=True)     # biased, centered two-pass
            return d * lax.rsqrt(var + BN_EPS)
        hn = jnp.concatenate([norm(h[:b]), norm(h[b:])], axis=0)   # B=8 -> sublane aligned
        return jnp.maximum(hn * g + be, 0.0)                       # affine + ReLU, f32

    # ---- Layer 1: Linear (bias cancelled by batch-mean subtraction) + BN + ReLU ----
    h = jnp.dot(x, w1_ref[...], preferred_element_type=jnp.float32)          # (2B, H) f32
    h = bn_relu_per_domain(h, g1_ref[...], be1_ref[...])

    # ---- Layer 2: Linear + BN + ReLU (MXU in bf16, f32 accumulation) ----
    h = jnp.dot(h.astype(jnp.bfloat16), w2_ref[...],
                preferred_element_type=jnp.float32)
    h = bn_relu_per_domain(h, g2_ref[...], be2_ref[...])

    # ---- Layer 3 (out_features = 1): VPU multiply + lane reduction ----
    z = jnp.sum(h * w3_ref[...], axis=-1, keepdims=True) + b3_ref[...]       # (2B, 1) logits

    # ---- sigmoid + BCE with constant labels, in logit (softplus) form ----
    #   source rows (y=1): -log(sigmoid(z))     = softplus(-z)
    #   target rows (y=0): -log(1 - sigmoid(z)) = softplus(+z)
    row = lax.broadcasted_iota(jnp.int32, z.shape, 0)
    u = jnp.where(row < b, -z, z)
    loss = jnp.maximum(u, 0.0) + jnp.log(1.0 + jnp.exp(-jnp.abs(u)))         # stable softplus
    loss = jnp.minimum(loss, BCE_LOG_CLAMP)             # mirror BCELoss's -100 log clamp

    # 0.5 * (mean_src + mean_tgt) == 0.5/B * sum over all 2B rows (equal batch sizes).
    out_ref[...] = 0.5 * inv_b * jnp.sum(loss, axis=0, keepdims=True)        # (1, 1)


@functools.lru_cache(maxsize=None)
def _build_adv_loss_fn(B, F, H):
    """Cache the pallas_call + jitted wrapper per shape (avoid per-call rebuild cost)."""
    def vmem():
        return pl.BlockSpec(memory_space=pltpu.MemorySpace.VMEM)   # full array -> VMEM

    call = pl.pallas_call(
        _adv_loss_kernel,
        out_shape=jax.ShapeDtypeStruct((1, 1), jnp.float32),
        in_specs=[vmem() for _ in range(9)],
        out_specs=vmem(),
        # NOTE: at realistic H, raise vmem_limit_bytes via pltpu.CompilerParams and
        # K-/N-tile w1/w2 (reduction axis last, "arbitrary") for v7x's 64 MiB VMEM.
    )

    def fn(source, target, w1, g1, be1, w2, g2, be2, w3, b3):
        x = jnp.concatenate([source, target], axis=0).astype(jnp.bfloat16)   # (2B, F)
        out = call(x,
                   w1.astype(jnp.bfloat16), g1, be1,
                   w2.astype(jnp.bfloat16), g2, be2,
                   w3.reshape(1, H), b3)
        return out[0, 0]

    return jax.jit(fn)


def init_discriminator_params(key, input_dim, hidden_dim):
    k1, k2, k3 = jax.random.split(key, 3)
    return dict(
        w1=0.1 * jax.random.normal(k1, (input_dim, hidden_dim), jnp.float32),
        b1=jnp.zeros((1, hidden_dim), jnp.float32),   # kept for module fidelity; BN cancels it
        g1=jnp.ones((1, hidden_dim), jnp.float32),    # BN1 gamma
        be1=jnp.zeros((1, hidden_dim), jnp.float32),  # BN1 beta
        w2=0.1 * jax.random.normal(k2, (hidden_dim, hidden_dim), jnp.float32),
        b2=jnp.zeros((1, hidden_dim), jnp.float32),   # kept for module fidelity; BN cancels it
        g2=jnp.ones((1, hidden_dim), jnp.float32),
        be2=jnp.zeros((1, hidden_dim), jnp.float32),
        w3=0.1 * jax.random.normal(k3, (hidden_dim, 1), jnp.float32),
        b3=jnp.zeros((1, 1), jnp.float32),
    )


def adversarial_loss(source, target, params, gamma=1.0, max_iter=1000, curr_iter=0):
    """Forward of AdversarialLoss at scheduler state `curr_iter`."""
    p = curr_iter / max_iter
    _lamb = 2.0 / (1.0 + np.exp(-gamma * p)) - 1.0   # noqa: F841
    # TODO(synk): gradient reversal (lamb-scaled negated grad) is a backward-only effect;
    # ReverseLayerF.forward is an identity, so lamb does not enter the forward loss value.

    assert source.shape == target.shape, "equal source/target batch assumed (as in jnp.concatenate)"
    B, F = source.shape
    H = params["w1"].shape[1]
    fn = _build_adv_loss_fn(int(B), int(F), int(H))

    # b1/b2 are intentionally not passed: a pre-BatchNorm bias is a forward no-op.
    return fn(source, target,
              params["w1"], params["g1"], params["be1"],
              params["w2"], params["g2"], params["be2"],
              params["w3"], params["b3"])


if __name__ == "__main__":
    B, F, H = 8, 32, 32   # batch, feature dim, discriminator hidden dim
    key = jax.random.PRNGKey(0)
    k_src, k_tgt, k_par = jax.random.split(key, 3)

    source = jax.random.normal(k_src, (B, F), jnp.float32)
    target = jax.random.normal(k_tgt, (B, F), jnp.float32) + 0.5

    params = init_discriminator_params(k_par, F, H)

    loss = adversarial_loss(source, target, params, gamma=1.0, max_iter=1000, curr_iter=0)
    loss = jax.block_until_ready(loss)
    assert loss.shape == () and bool(jnp.isfinite(loss))
    print("KERNEL_OK")
</pallas_src>

<mosaic_0001>
module attributes {stable_mosaic.version = 11 : i64} {
  func.func @_adv_loss_kernel(%arg0: memref<16x32xbf16, #tpu.memory_space<vmem>>, %arg1: memref<32x32xbf16, #tpu.memory_space<vmem>>, %arg2: memref<1x32xf32, #tpu.memory_space<vmem>>, %arg3: memref<1x32xf32, #tpu.memory_space<vmem>>, %arg4: memref<32x32xbf16, #tpu.memory_space<vmem>>, %arg5: memref<1x32xf32, #tpu.memory_space<vmem>>, %arg6: memref<1x32xf32, #tpu.memory_space<vmem>>, %arg7: memref<1x32xf32, #tpu.memory_space<vmem>>, %arg8: memref<1x1xf32, #tpu.memory_space<vmem>>, %arg9: memref<1x1xf32, #tpu.memory_space<vmem>>) attributes {dimension_semantics = [], scalar_prefetch = 0 : i64, scratch_operands = 0 : i64, tpu.core_type = #tpu.core_type<tc>} {
    %c0 = arith.constant 0 : index
    %c0_0 = arith.constant 0 : index
    %0 = vector.load %arg0[%c0, %c0_0] : memref<16x32xbf16, #tpu.memory_space<vmem>>, vector<16x32xbf16>
    %c0_1 = arith.constant 0 : index
    %c0_2 = arith.constant 0 : index
    %1 = vector.load %arg1[%c0_1, %c0_2] : memref<32x32xbf16, #tpu.memory_space<vmem>>, vector<32x32xbf16>
    %cst = arith.constant dense<0.000000e+00> : vector<16x32xf32>
    %2 = tpu.matmul %0, %1, %cst {dimension_numbers = #tpu.dot_dimension_numbers<[1], [0], [0], [1], [0, 0, 1, 1], [], []>} : vector<16x32xbf16>, vector<32x32xbf16>, vector<16x32xf32> -> vector<16x32xf32>
    %c0_3 = arith.constant 0 : index
    %c0_4 = arith.constant 0 : index
    %3 = vector.load %arg2[%c0_3, %c0_4] : memref<1x32xf32, #tpu.memory_space<vmem>>, vector<1x32xf32>
    %c0_5 = arith.constant 0 : index
    %c0_6 = arith.constant 0 : index
    %4 = vector.load %arg3[%c0_5, %c0_6] : memref<1x32xf32, #tpu.memory_space<vmem>>, vector<1x32xf32>
    %5 = vector.extract_strided_slice %2 {offsets = [0, 0], sizes = [8, 32], strides = [1, 1]} : vector<16x32xf32> to vector<8x32xf32>
    %cst_7 = arith.constant dense<0.000000e+00> : vector<32xf32>
    %6 = vector.multi_reduction <add>, %5, %cst_7 [0] : vector<8x32xf32> to vector<32xf32>
    %7 = vector.shape_cast %6 : vector<32xf32> to vector<1x32xf32>
    %cst_8 = arith.constant 8.000000e+00 : f32
    %8 = vector.broadcast %cst_8 : f32 to vector<1x32xf32>
    %9 = arith.divf %7, %8 : vector<1x32xf32>
    %10 = vector.broadcast %9 : vector<1x32xf32> to vector<8x32xf32>
    %11 = arith.subf %5, %10 : vector<8x32xf32>
    %12 = arith.mulf %11, %11 : vector<8x32xf32>
    %cst_9 = arith.constant dense<0.000000e+00> : vector<32xf32>
    %13 = vector.multi_reduction <add>, %12, %cst_9 [0] : vector<8x32xf32> to vector<32xf32>
    %14 = vector.shape_cast %13 : vector<32xf32> to vector<1x32xf32>
    %cst_10 = arith.constant 8.000000e+00 : f32
    %15 = vector.broadcast %cst_10 : f32 to vector<1x32xf32>
    %16 = arith.divf %14, %15 : vector<1x32xf32>
    %cst_11 = arith.constant 9.99999974E-6 : f32
    %17 = vector.broadcast %cst_11 : f32 to vector<1x32xf32>
    %18 = arith.addf %16, %17 : vector<1x32xf32>
    %19 = math.rsqrt %18 : vector<1x32xf32>
    %20 = vector.broadcast %19 : vector<1x32xf32> to vector<8x32xf32>
    %21 = arith.mulf %11, %20 : vector<8x32xf32>
    %22 = vector.extract_strided_slice %2 {offsets = [8, 0], sizes = [8, 32], strides = [1, 1]} : vector<16x32xf32> to vector<8x32xf32>
    %cst_12 = arith.constant dense<0.000000e+00> : vector<32xf32>
    %23 = vector.multi_reduction <add>, %22, %cst_12 [0] : vector<8x32xf32> to vector<32xf32>
    %24 = vector.shape_cast %23 : vector<32xf32> to vector<1x32xf32>
    %cst_13 = arith.constant 8.000000e+00 : f32
    %25 = vector.broadcast %cst_13 : f32 to vector<1x32xf32>
    %26 = arith.divf %24, %25 : vector<1x32xf32>
    %27 = vector.broadcast %26 : vector<1x32xf32> to vector<8x32xf32>
    %28 = arith.subf %22, %27 : vector<8x32xf32>
    %29 = arith.mulf %28, %28 : vector<8x32xf32>
    %cst_14 = arith.constant dense<0.000000e+00> : vector<32xf32>
    %30 = vector.multi_reduction <add>, %29, %cst_14 [0] : vector<8x32xf32> to vector<32xf32>
    %31 = vector.shape_cast %30 : vector<32xf32> to vector<1x32xf32>
    %cst_15 = arith.constant 8.000000e+00 : f32
    %32 = vector.broadcast %cst_15 : f32 to vector<1x32xf32>
    %33 = arith.divf %31, %32 : vector<1x32xf32>
    %cst_16 = arith.constant 9.99999974E-6 : f32
    %34 = vector.broadcast %cst_16 : f32 to vector<1x32xf32>
    %35 = arith.addf %33, %34 : vector<1x32xf32>
    %36 = math.rsqrt %35 : vector<1x32xf32>
    %37 = vector.broadcast %36 : vector<1x32xf32> to vector<8x32xf32>
    %38 = arith.mulf %28, %37 : vector<8x32xf32>
    %39 = tpu.concatenate %21, %38 in 0 : vector<8x32xf32>, vector<8x32xf32> -> vector<16x32xf32>
    %40 = vector.broadcast %3 : vector<1x32xf32> to vector<16x32xf32>
    %41 = arith.mulf %39, %40 : vector<16x32xf32>
    %42 = vector.broadcast %4 : vector<1x32xf32> to vector<16x32xf32>
    %43 = arith.addf %41, %42 : vector<16x32xf32>
    %cst_17 = arith.constant 0.000000e+00 : f32
    %44 = vector.broadcast %cst_17 : f32 to vector<16x32xf32>
    %45 = arith.maximumf %43, %44 : vector<16x32xf32>
    %46 = arith.truncf %45 : vector<16x32xf32> to vector<16x32xbf16>
    %c0_18 = arith.constant 0 : index
    %c0_19 = arith.constant 0 : index
    %47 = vector.load %arg4[%c0_18, %c0_19] : memref<32x32xbf16, #tpu.memory_space<vmem>>, vector<32x32xbf16>
    %cst_20 = arith.constant dense<0.000000e+00> : vector<16x32xf32>
    %48 = tpu.matmul %46, %47, %cst_20 {dimension_numbers = #tpu.dot_dimension_numbers<[1], [0], [0], [1], [0, 0, 1, 1], [], []>} : vector<16x32xbf16>, vector<32x32xbf16>, vector<16x32xf32> -> vector<16x32xf32>
    %c0_21 = arith.constant 0 : index
    %c0_22 = arith.constant 0 : index
    %49 = vector.load %arg5[%c0_21, %c0_22] : memref<1x32xf32, #tpu.memory_space<vmem>>, vector<1x32xf32>
    %c0_23 = arith.constant 0 : index
    %c0_24 = arith.constant 0 : index
    %50 = vector.load %arg6[%c0_23, %c0_24] : memref<1x32xf32, #tpu.memory_space<vmem>>, vector<1x32xf32>
    %51 = vector.extract_strided_slice %48 {offsets = [0, 0], sizes = [8, 32], strides = [1, 1]} : vector<16x32xf32> to vector<8x32xf32>
    %cst_25 = arith.constant dense<0.000000e+00> : vector<32xf32>
    %52 = vector.multi_reduction <add>, %51, %cst_25 [0] : vector<8x32xf32> to vector<32xf32>
    %53 = vector.shape_cast %52 : vector<32xf32> to vector<1x32xf32>
    %cst_26 = arith.constant 8.000000e+00 : f32
    %54 = vector.broadcast %cst_26 : f32 to vector<1x32xf32>
    %55 = arith.divf %53, %54 : vector<1x32xf32>
    %56 = vector.broadcast %55 : vector<1x32xf32> to vector<8x32xf32>
    %57 = arith.subf %51, %56 : vector<8x32xf32>
    %58 = arith.mulf %57, %57 : vector<8x32xf32>
    %cst_27 = arith.constant dense<0.000000e+00> : vector<32xf32>
    %59 = vector.multi_reduction <add>, %58, %cst_27 [0] : vector<8x32xf32> to vector<32xf32>
    %60 = vector.shape_cast %59 : vector<32xf32> to vector<1x32xf32>
    %cst_28 = arith.constant 8.000000e+00 : f32
    %61 = vector.broadcast %cst_28 : f32 to vector<1x32xf32>
    %62 = arith.divf %60, %61 : vector<1x32xf32>
    %cst_29 = arith.constant 9.99999974E-6 : f32
    %63 = vector.broadcast %cst_29 : f32 to vector<1x32xf32>
    %64 = arith.addf %62, %63 : vector<1x32xf32>
    %65 = math.rsqrt %64 : vector<1x32xf32>
    %66 = vector.broadcast %65 : vector<1x32xf32> to vector<8x32xf32>
    %67 = arith.mulf %57, %66 : vector<8x32xf32>
    %68 = vector.extract_strided_slice %48 {offsets = [8, 0], sizes = [8, 32], strides = [1, 1]} : vector<16x32xf32> to vector<8x32xf32>
    %cst_30 = arith.constant dense<0.000000e+00> : vector<32xf32>
    %69 = vector.multi_reduction <add>, %68, %cst_30 [0] : vector<8x32xf32> to vector<32xf32>
    %70 = vector.shape_cast %69 : vector<32xf32> to vector<1x32xf32>
    %cst_31 = arith.constant 8.000000e+00 : f32
    %71 = vector.broadcast %cst_31 : f32 to vector<1x32xf32>
    %72 = arith.divf %70, %71 : vector<1x32xf32>
    %73 = vector.broadcast %72 : vector<1x32xf32> to vector<8x32xf32>
    %74 = arith.subf %68, %73 : vector<8x32xf32>
    %75 = arith.mulf %74, %74 : vector<8x32xf32>
    %cst_32 = arith.constant dense<0.000000e+00> : vector<32xf32>
    %76 = vector.multi_reduction <add>, %75, %cst_32 [0] : vector<8x32xf32> to vector<32xf32>
    %77 = vector.shape_cast %76 : vector<32xf32> to vector<1x32xf32>
    %cst_33 = arith.constant 8.000000e+00 : f32
    %78 = vector.broadcast %cst_33 : f32 to vector<1x32xf32>
    %79 = arith.divf %77, %78 : vector<1x32xf32>
    %cst_34 = arith.constant 9.99999974E-6 : f32
    %80 = vector.broadcast %cst_34 : f32 to vector<1x32xf32>
    %81 = arith.addf %79, %80 : vector<1x32xf32>
    %82 = math.rsqrt %81 : vector<1x32xf32>
    %83 = vector.broadcast %82 : vector<1x32xf32> to vector<8x32xf32>
    %84 = arith.mulf %74, %83 : vector<8x32xf32>
    %85 = tpu.concatenate %67, %84 in 0 : vector<8x32xf32>, vector<8x32xf32> -> vector<16x32xf32>
    %86 = vector.broadcast %49 : vector<1x32xf32> to vector<16x32xf32>
    %87 = arith.mulf %85, %86 : vector<16x32xf32>
    %88 = vector.broadcast %50 : vector<1x32xf32> to vector<16x32xf32>
    %89 = arith.addf %87, %88 : vector<16x32xf32>
    %cst_35 = arith.constant 0.000000e+00 : f32
    %90 = vector.broadcast %cst_35 : f32 to vector<16x32xf32>
    %91 = arith.maximumf %89, %90 : vector<16x32xf32>
    %c0_36 = arith.constant 0 : index
    %c0_37 = arith.constant 0 : index
    %92 = vector.load %arg7[%c0_36, %c0_37] : memref<1x32xf32, #tpu.memory_space<vmem>>, vector<1x32xf32>
    %93 = vector.broadcast %92 : vector<1x32xf32> to vector<16x32xf32>
    %94 = arith.mulf %91, %93 : vector<16x32xf32>
    %cst_38 = arith.constant dense<0.000000e+00> : vector<16xf32>
    %95 = vector.multi_reduction <add>, %94, %cst_38 [1] : vector<16x32xf32> to vector<16xf32>
    %96 = vector.shape_cast %95 : vector<16xf32> to vector<16x1xf32>
    %c0_39 = arith.constant 0 : index
    %c0_40 = arith.constant 0 : index
    %97 = vector.load %arg8[%c0_39, %c0_40] : memref<1x1xf32, #tpu.memory_space<vmem>>, vector<1x1xf32>
    %98 = vector.broadcast %97 : vector<1x1xf32> to vector<16x1xf32>
    %99 = arith.addf %96, %98 : vector<16x1xf32>
    %100 = tpu.iota {dimensions = array<i32: 0>} : vector<16x1xi32>
    %c8_i32 = arith.constant 8 : i32
    %101 = vector.broadcast %c8_i32 : i32 to vector<16x1xi32>
    %102 = arith.cmpi slt, %100, %101 : vector<16x1xi32>
    %cst_41 = arith.constant 0.000000e+00 : f32
    %103 = vector.broadcast %cst_41 : f32 to vector<16x1xf32>
    %104 = arith.subf %103, %99 : vector<16x1xf32>
    %105 = arith.select %102, %104, %99 : vector<16x1xi1>, vector<16x1xf32>
    %cst_42 = arith.constant 0.000000e+00 : f32
    %106 = vector.broadcast %cst_42 : f32 to vector<16x1xf32>
    %107 = arith.maximumf %105, %106 : vector<16x1xf32>
    %108 = math.absf %105 : vector<16x1xf32>
    %cst_43 = arith.constant 0.000000e+00 : f32
    %109 = vector.broadcast %cst_43 : f32 to vector<16x1xf32>
    %110 = arith.subf %109, %108 : vector<16x1xf32>
    %111 = math.exp %110 : vector<16x1xf32>
    %cst_44 = arith.constant 1.000000e+00 : f32
    %112 = vector.broadcast %cst_44 : f32 to vector<16x1xf32>
    %113 = arith.addf %112, %111 : vector<16x1xf32>
    %114 = math.log %113 : vector<16x1xf32>
    %115 = arith.addf %107, %114 : vector<16x1xf32>
    %cst_45 = arith.constant 1.000000e+02 : f32
    %116 = vector.broadcast %cst_45 : f32 to vector<16x1xf32>
    %117 = arith.minimumf %115, %116 : vector<16x1xf32>
    %cst_46 = arith.constant dense<0.000000e+00> : vector<1xf32>
    %118 = vector.multi_reduction <add>, %117, %cst_46 [0] : vector<16x1xf32> to vector<1xf32>
    %119 = vector.shape_cast %118 : vector<1xf32> to vector<1x1xf32>
    %cst_47 = arith.constant 6.250000e-02 : f32
    %120 = vector.broadcast %cst_47 : f32 to vector<1x1xf32>
    %121 = arith.mulf %120, %119 : vector<1x1xf32>
    %c0_48 = arith.constant 0 : index
    %c0_49 = arith.constant 0 : index
    %122 = vector.load %arg9[%c0_48, %c0_49] : memref<1x1xf32, #tpu.memory_space<vmem>>, vector<1x1xf32>
    tpu.vector_store %arg9[%c0_48, %c0_49], %121 {strides = array<i32>} : memref<1x1xf32, #tpu.memory_space<vmem>>, vector<1x1xf32>,
    return
  }
}

</mosaic_0001>

<bundles_post_ra>
// kernel: fn.1
= control target key start
LH: loop header
LB: loop body
LE: loop exit
PB: predicated region body
PF: predicated region fallthrough
CT: control target
= control target key end

     0   :  { %s552_s0 = inlined_call_operand.vmem [shape: bf16[16,32], index: 0, kind: input, shape index: {}]   ;;  %s553_s1 = inlined_call_operand.vmem [shape: bf16[32,32], index: 1, kind: input, shape index: {}]   ;;  %s554_s2 = inlined_call_operand.vmem [shape: f32[1,32], index: 2, kind: input, shape index: {}]   ;;  %s555_s3 = inlined_call_operand.vmem [shape: f32[1,32], index: 3, kind: input, shape index: {}]   ;;  %s556_s4 = inlined_call_operand.vmem [shape: bf16[32,32], index: 4, kind: input, shape index: {}]   ;;  %s557_s5 = inlined_call_operand.vmem [shape: f32[1,32], index: 5, kind: input, shape index: {}]   ;;  %s558_s6 = inlined_call_operand.vmem [shape: f32[1,32], index: 6, kind: input, shape index: {}]   ;;  %s559_s7 = inlined_call_operand.vmem [shape: f32[1,32], index: 7, kind: input, shape index: {}]   ;;  %s560_s8 = inlined_call_operand.<no memory space> [shape: f32[1,1], index: 8, kind: input, shape index: {}]   ;;  %s561_s9 = inlined_call_operand.hbm [shape: f32[1,1], index: 9, kind: output, shape index: {}]  }
   0x1   :  { %v14_v0 = vstv %s560_s8 }
   0x2   :  { %15 = vst [vmem:[#allocation2] sm:$0x1] %v14_v0 }
   0x3   :  { %v408_v1 = vld [vmem:[%s553_s1 + $0x8] sm:$0xff]   ;;  %v451_v2 = vmov 0.0   ;;  %v409_v3 = vld [vmem:[%s553_s1] sm:$0xff]   ;;  %vm452_vm0 = vmmov 0  }
   0x4   :  { %389 = vmatprep.subr.bf16.mxu0 %v451_v2  ;;  %397 = vmatprep.subr.bf16.mxu1 %v451_v2 }
   0x5   :  { %390 = vmatpush3.bf16.msra.mxu0 %v408_v1  ;;  %393 = vmatprep.mubr.msk.bf16.mxu0 %vm452_vm0, %v451_v2 }
   0x6   :  { %391 = vmatprep.subr.bf16.mxu0 %v451_v2  ;;  %401 = vmatprep.mubr.msk.bf16.mxu1 %vm452_vm0, %v451_v2 }
   0x7   :  { %16 = vsyncpa [#allocation4], 0  ;;  %v410_v4 = vld [vmem:[%s552_s0] sm:$0xff]   ;;  %vm59_vm1 = vcmask 261120   ;;  %v411_v5 = vld [vmem:[%s556_s4 + $0x8] sm:$0xff]   ;;  %vm343_vm2 = vcmask 7168  }
   0x8   :  { %398 = vmatpush3.bf16.msra.mxu1 %v411_v5  ;;  %v412_v6 = vld [vmem:[%s556_s4] sm:$0xff]   ;;  %vm354_vm3 = vcmask 0  }
   0x9   :  { %392 = vmatpush3.bf16.msra.mxu0 %v409_v3  ;;  %399 = vmatprep.subr.bf16.mxu1 %v451_v2  ;;  %v374_v50 = vld [vmem:[%s554_s2] ss:$0 sm:$0xff] }
   0xa   :  { %v375_v54 = vld [vmem:[%s555_s3] ss:$0 sm:$0xff] }
   0xc   :  { %394 = vmatmul.mubr.msk.bf16.vlgmr.msra.gmra.mxu0 %vm59_vm1, %v410_v4  ;;  %400 = vmatpush3.bf16.msra.mxu1 %v412_v6 }
  0xcc   :  { %v97_v7 = vpop.f32.mrf.mxu0 }
  0xcd   :  { %v106_v8 = vsel %vm59_vm1, %v97_v7, 0.0 }
  0xce   :  { %v107_v9 = vrot.slane %v106_v8, 4  ;;  %v395_v10 = vpop.f32.mrf.mxu0 }
  0xd0   :  { %v108_v11 = vadd.f32 %v107_v9, %v106_v8  ;;  %v100_v12 = vpop.f32.mrf.mxu0 }
  0xd1   :  { %v128_v13 = vsel %vm59_vm1, %v100_v12, 0.0 }
  0xd2   :  { %v109_v14 = vrot.slane %v108_v11, 2  ;;  %v129_v15 = vrot.slane %v128_v13, 4  ;;  %v396_v16 = vpop.f32.mrf.mxu0 }
  0xd4   :  { %v110_v17 = vadd.f32 %v109_v14, %v108_v11  ;;  %v130_v18 = vadd.f32 %v129_v15, %v128_v13 }
  0xd6   :  { %v111_v19 = vrot.slane %v110_v17, 1  ;;  %v131_v20 = vrot.slane %v130_v18, 2 }
  0xd8   :  { %v112_v21 = vadd.f32 %v111_v19, %v110_v17  ;;  %v132_v22 = vadd.f32 %v131_v20, %v130_v18 }
  0xda   :  { %v114_v23 = vmul.f32 0.125, %v112_v21  ;;  %v133_v24 = vrot.slane %v132_v22, 1 }
  0xdc   :  { %v115_v25 = vsub.f32 %v97_v7, %v114_v23  ;;  %v134_v26 = vadd.f32 %v133_v24, %v132_v22 }
  0xde   :  { %v116_v27 = vmul.f32 %v115_v25, %v115_v25  ;;  %v135_v28 = vmul.f32 0.125, %v134_v26 }
  0xe0   :  { %v117_v29 = vsel %vm59_vm1, %v116_v27, 0.0  ;;  %v136_v30 = vsub.f32 %v100_v12, %v135_v28 }
  0xe1   :  { %v118_v31 = vrot.slane %v117_v29, 4 }
  0xe2   :  { %v137_v32 = vmul.f32 %v136_v30, %v136_v30 }
  0xe3   :  { %v119_v33 = vadd.f32 %v118_v31, %v117_v29 }
  0xe4   :  { %v138_v34 = vsel %vm59_vm1, %v137_v32, 0.0 }
  0xe5   :  { %v120_v35 = vrot.slane %v119_v33, 2  ;;  %v139_v36 = vrot.slane %v138_v34, 4 }
  0xe7   :  { %v121_v37 = vadd.f32 %v120_v35, %v119_v33  ;;  %v140_v38 = vadd.f32 %v139_v36, %v138_v34 }
  0xe9   :  { %v122_v39 = vrot.slane %v121_v37, 1  ;;  %v141_v40 = vrot.slane %v140_v38, 2 }
  0xeb   :  { %v123_v41 = vadd.f32 %v122_v39, %v121_v37  ;;  %v142_v42 = vadd.f32 %v141_v40, %v140_v38 }
  0xed   :  { %v124_v43 = vmul.f32 0.125, %v123_v41  ;;  %v143_v44 = vrot.slane %v142_v42, 1  ;;  %v379_v41 = vld [vmem:[%s557_s5] ss:$0 sm:$0xff]  ;;  %s453_s5 = smov [#allocation3]  }
  0xef   :  { %v125_v45 = vadd.f32 1e-05, %v124_v43  ;;  %v144_v46 = vadd.f32 %v143_v44, %v142_v42  ;;  %v380_v43 = vld [vmem:[%s558_s6] ss:$0 sm:$0xff]  ;;  %s362_s6 = sshll.u32 %s453_s5, 4  ;;  %s363_s6 = int_to_ptr.vmem [resolvable:$true] %s362_s6 }
  0xf0   :  { %s433_s25 = scalar_lea.vmem %s363_s6, 32  ;;  %p434_p1 = scmp.lt.s32.totalorder %s363_s6, %s363_s6 }
  0xf1   :  { %413 = vrsqrt.f32 %v125_v45  ;;  %v145_v47 = vmul.f32 0.125, %v144_v46 }
  0xf3   :  { %v146_v48 = vadd.f32 1e-05, %v145_v47 }
  0xf5   :  { %415 = vrsqrt.f32 %v146_v48  ;;  %v381_v48 = vld [vmem:[%s559_s7] ss:$0 sm:$0xff]  ;;  %s429_s7 = scalar_lea.vmem %s363_s6, 16 }
  0xf6   :  { %p430_p0 = scmp.ne.s32.totalorder %s363_s6, %s429_s7  ;;  %p435_p2 = scmp.lt.s32.totalorder %s433_s25, %s429_s7 }
  0xf8   :  { %p436_p3 = por %p435_p2, %p434_p1 }
  0xfa   :  { %p437_p4 = pnand %p436_p3, %p430_p0 }
  0xfe   :  { %v414_v49 = vpop.eup %413 }
  0xff   :  { %v127_v51 = vmul.f32 %v414_v49, %v115_v25 }
 0x101   :  { %v155_v52 = vmul.f32 %v374_v50, %v127_v51 }
 0x102   :  { %v416_v53 = vpop.eup %415 }
 0x103   :  { %v148_v55 = vmul.f32 %v416_v53, %v136_v30  ;;  %v163_v56 = vadd.f32 %v375_v54, %v155_v52 }
 0x105   :  { %v156_v57 = vmul.f32 %v374_v50, %v148_v55  ;;  %v165_v59 = vmax.f32 %v163_v56, 0.0 }
 0x107   :  { %v164_v58 = vadd.f32 %v375_v54, %v156_v57  ;;  %v382_v57 = vld [vmem:[#allocation2] ss:$0 sm:$0xff] }
 0x109   :  { %v166_v60 = vmax.f32 %v164_v58, 0.0 }
 0x10b   :  { %v167_v61 = vpack.c.bf16 %v166_v60, %v165_v59 }
 0x10d   :  { %402 = vmatmul.mubr.msk.bf16.vlgmr.msra.gmra.mxu1 %vm59_vm1, %v167_v61 }
 0x1cd   :  { %v221_v62 = vpop.f32.mrf.mxu1 }
 0x1ce   :  { %v230_v63 = vsel %vm59_vm1, %v221_v62, 0.0 }
 0x1cf   :  { %v231_v0 = vrot.slane %v230_v63, 4  ;;  %v403_v1 = vpop.f32.mrf.mxu1 }
 0x1d1   :  { %v232_v2 = vadd.f32 %v231_v0, %v230_v63  ;;  %v224_v3 = vpop.f32.mrf.mxu1 }
 0x1d2   :  { %v251_v4 = vsel %vm59_vm1, %v224_v3, 0.0 }
 0x1d3   :  { %v233_v5 = vrot.slane %v232_v2, 2  ;;  %v252_v6 = vrot.slane %v251_v4, 4  ;;  %v404_v7 = vpop.f32.mrf.mxu1 }
 0x1d5   :  { %v234_v8 = vadd.f32 %v233_v5, %v232_v2  ;;  %v253_v9 = vadd.f32 %v252_v6, %v251_v4 }
 0x1d7   :  { %v235_v10 = vrot.slane %v234_v8, 1  ;;  %v254_v11 = vrot.slane %v253_v9, 2 }
 0x1d9   :  { %v236_v12 = vadd.f32 %v235_v10, %v234_v8  ;;  %v255_v13 = vadd.f32 %v254_v11, %v253_v9 }
 0x1db   :  { %v237_v14 = vmul.f32 0.125, %v236_v12  ;;  %v256_v15 = vrot.slane %v255_v13, 1 }
 0x1dd   :  { %v238_v16 = vsub.f32 %v221_v62, %v237_v14  ;;  %v257_v17 = vadd.f32 %v256_v15, %v255_v13 }
 0x1df   :  { %v239_v18 = vmul.f32 %v238_v16, %v238_v16  ;;  %v258_v19 = vmul.f32 0.125, %v257_v17 }
 0x1e1   :  { %v240_v20 = vsel %vm59_vm1, %v239_v18, 0.0  ;;  %v259_v21 = vsub.f32 %v224_v3, %v258_v19 }
 0x1e2   :  { %v241_v22 = vrot.slane %v240_v20, 4 }
 0x1e3   :  { %v260_v23 = vmul.f32 %v259_v21, %v259_v21 }
 0x1e4   :  { %v242_v24 = vadd.f32 %v241_v22, %v240_v20 }
 0x1e5   :  { %v261_v25 = vsel %vm59_vm1, %v260_v23, 0.0 }
 0x1e6   :  { %v243_v26 = vrot.slane %v242_v24, 2  ;;  %v262_v27 = vrot.slane %v261_v25, 4 }
 0x1e8   :  { %v244_v28 = vadd.f32 %v243_v26, %v242_v24  ;;  %v263_v29 = vadd.f32 %v262_v27, %v261_v25 }
 0x1ea   :  { %v245_v30 = vrot.slane %v244_v28, 1  ;;  %v264_v31 = vrot.slane %v263_v29, 2 }
 0x1ec   :  { %v246_v32 = vadd.f32 %v245_v30, %v244_v28  ;;  %v265_v33 = vadd.f32 %v264_v31, %v263_v29 }
 0x1ee   :  { %v247_v34 = vmul.f32 0.125, %v246_v32  ;;  %v266_v35 = vrot.slane %v265_v33, 1 }
 0x1f0   :  { %v248_v36 = vadd.f32 1e-05, %v247_v34  ;;  %v267_v37 = vadd.f32 %v266_v35, %v265_v33 }
 0x1f2   :  { %417 = vrsqrt.f32 %v248_v36  ;;  %v268_v38 = vmul.f32 0.125, %v267_v37 }
 0x1f4   :  { %v269_v39 = vadd.f32 1e-05, %v268_v38 }
 0x1f6   :  { %419 = vrsqrt.f32 %v269_v39 }
 0x1ff   :  { %v418_v40 = vpop.eup %417 }
 0x200   :  { %v250_v42 = vmul.f32 %v418_v40, %v238_v16 }
 0x202   :  { %v278_v44 = vmul.f32 %v379_v41, %v250_v42 }
 0x203   :  { %v420_v45 = vpop.eup %419 }
 0x204   :  { %v271_v46 = vmul.f32 %v420_v45, %v259_v21  ;;  %v286_v47 = vadd.f32 %v380_v43, %v278_v44 }
 0x206   :  { %v279_v49 = vmul.f32 %v379_v41, %v271_v46  ;;  %v288_v50 = vmax.f32 %v286_v47, 0.0 }
 0x208   :  { %v297_v51 = vmul.f32 %v381_v48, %v288_v50  ;;  %v287_v52 = vadd.f32 %v380_v43, %v279_v49 }
 0x20a   :  { %v299_v53 = vsel %vm59_vm1, %v297_v51, 0.0  ;;  %v289_v54 = vmax.f32 %v287_v52, 0.0 }
 0x20b   :  { %300 = vadd.xlane.f32.xlu0 %v299_v53 }
 0x20c   :  { %v298_v55 = vmul.f32 %v381_v48, %v289_v54 }
 0x20e   :  { %v302_v56 = vsel %vm59_vm1, %v298_v55, 0.0 }
 0x20f   :  { %303 = vadd.xlane.f32.xlu0 %v302_v56 }
 0x294   :  { %v301_v58 = vpop.xlane.xlu0 %300 }
 0x295   :  { %v312_v59 = vadd.f32 %v382_v57, %v301_v58 }
 0x297   :  { %v319_v60 = vsub.f32 0.0, %v312_v59 }
 0x298   :  { %v304_v61 = vpop.xlane.xlu0 %303 }
 0x299   :  { %v325_v62 = vand.u32 2147483647, %v319_v60  ;;  %v313_v63 = vadd.f32 %v382_v57, %v304_v61  ;;  %v323_v10 = vmax.f32 %v319_v60, 0.0 }
 0x29b   :  { %v327_v0 = vsub.f32 0.0, %v325_v62  ;;  %v326_v1 = vand.u32 2147483647, %v313_v63  ;;  %v324_v14 = vmax.f32 %v313_v63, 0.0 }
 0x29d   :  { %v329_v2 = vmul.f32 1.442695, %v327_v0  ;;  %v328_v3 = vsub.f32 0.0, %v326_v1 }
 0x29f   :  { %421 = vpow2.f32 %v329_v2  ;;  %v331_v4 = vmul.f32 1.442695, %v328_v3 }
 0x2a1   :  { %423 = vpow2.f32 %v331_v4 }
 0x2ac   :  { %v422_v5 = vpop.eup %421 }
 0x2ad   :  { %v333_v6 = vadd.f32 1.0, %v422_v5 }
 0x2ae   :  { %v424_v7 = vpop.eup %423 }
 0x2af   :  { %425 = vlog2.f32 %v333_v6  ;;  %v334_v8 = vadd.f32 1.0, %v424_v7 }
 0x2b1   :  { %427 = vlog2.f32 %v334_v8 }
 0x2bc   :  { %v426_v9 = vpop.eup %425 }
 0x2bd   :  { %v336_v11 = vmul.f32 0.6931472, %v426_v9 }
 0x2be   :  { %v428_v12 = vpop.eup %427 }
 0x2bf   :  { %v339_v13 = vadd.f32 %v336_v11, %v323_v10  ;;  %v338_v15 = vmul.f32 0.6931472, %v428_v12 }
 0x2c1   :  { %v341_v16 = vmin.f32 %v339_v13, 100.0  ;;  %v340_v17 = vadd.f32 %v338_v15, %v324_v14 }
 0x2c3   :  { %v342_v18 = vmin.f32 %v340_v17, 100.0  ;;  %v344_v19 = vsel %vm343_vm2, %v341_v16, 0.0 }
 0x2c5   :  { %v345_v20 = vsel %vm343_vm2, %v342_v18, 0.0 }
 0x2c6   :  { %v346_v21 = vadd.f32 %v345_v20, %v344_v19 }
 0x2c8   :  { %v347_v22 = vrot.slane %v346_v21, 4 }
 0x2ca   :  { %v348_v23 = vadd.f32 %v347_v22, %v346_v21 }
 0x2cc   :  { %v349_v24 = vrot.slane %v348_v23, 2 }
 0x2ce   :  { %v350_v25 = vadd.f32 %v349_v24, %v348_v23 }
 0x2d0   :  { %v351_v26 = vrot.slane %v350_v25, 1 }
 0x2d2   :  { %v352_v27 = vadd.f32 %v351_v26, %v350_v25 }
 0x2d4   :  { %v353_v28 = vmul.f32 0.0625, %v352_v27 }
 0x2d6   :  { %355 = vst.msk [vmem:[#allocation3] sm:$0x1] %vm354_vm3, %v353_v28 }
 0x2d7   :  { %440 = shalt.err (!%p437_p4)
}
 0x2d8   :  { %365 = dma.vmem_to_hbm [thread:$0]  %s363_s6, 16, %s561_s9, [#allocation4]  }
 0x2d9   :  { %449 = dma.done.wait [#allocation4], 16  }
 0x2da   :  { %450 = vsyncadd [#allocation4], 4294967280 }
 0x2db   :  { %369 = vsyncpa [#allocation4], 1 }

</bundles_post_ra>
